<compile_context>
chip_gen: v5e
topology: v5e:2x2
jax: 0.10.0
libtpu: 0.0.40
codegen_flags: <defaults>
</compile_context>

<pallas_src>
import jax
import jax.numpy as jnp
from jax.experimental import pallas as pl
from jax.experimental.pallas import tpu as pltpu

_COLS = 512          # lane-dense last dim: large multiple of 128
_BLOCK_ROWS = 1024   # 1024 x 512 f32 = 2 MiB per block buffer


def _scale_by_two_kernel(x_ref, o_ref):
    o_ref[...] = x_ref[...] * 2


def pt_module_forward(x):
    """Equivalent of PtModule.forward: returns x * 2 with identical shape/dtype."""
    orig_shape = x.shape
    orig_dtype = x.dtype
    total = x.size

    flat = x.reshape(-1)

    # Pad to a multiple of 8 * _COLS so the 2-D view is (8k, 512): full
    # sublane/lane utilization and a shape compatible with (8, 128) tiling.
    pad_unit = 8 * _COLS
    padded_total = ((total + pad_unit - 1) // pad_unit) * pad_unit
    if padded_total != total:
        flat = jnp.pad(flat, (0, padded_total - total))

    rows = padded_total // _COLS
    block_rows = min(_BLOCK_ROWS, rows)
    grid = (pl.cdiv(rows, block_rows),)

    x2d = flat.reshape(rows, _COLS)

    out2d = pl.pallas_call(
        _scale_by_two_kernel,
        out_shape=jax.ShapeDtypeStruct((rows, _COLS), orig_dtype),
        grid=grid,
        in_specs=[pl.BlockSpec((block_rows, _COLS), lambda i: (i, 0))],
        out_specs=pl.BlockSpec((block_rows, _COLS), lambda i: (i, 0)),
        compiler_params=pltpu.CompilerParams(
            dimension_semantics=("parallel",),
        ),
    )(x2d)

    out_flat = out2d.reshape(-1)
    if padded_total != total:
        out_flat = out_flat[:total]
    return out_flat.reshape(orig_shape)


if __name__ == "__main__":
    key = jax.random.PRNGKey(0)
    # Small NCHW input consistent with the module (any shape works).
    x = jax.random.normal(key, (2, 4, 16, 16), dtype=jnp.float32)

    out = pt_module_forward(x)
    out = jax.block_until_ready(out)

    # Verify against the reference semantics (x * 2).
    ref = x * 2
    assert out.shape == x.shape and out.dtype == x.dtype
    assert jnp.allclose(out, ref, atol=0, rtol=0)

    print("KERNEL_OK")
</pallas_src>

<mosaic_0001>
module attributes {stable_mosaic.version = 11 : i64} {
  func.func @_scale_by_two_kernel(%arg0: i32, %arg1: memref<8x512xf32, #tpu.memory_space<vmem>>, %arg2: memref<8x512xf32, #tpu.memory_space<vmem>>) attributes {dimension_semantics = [#tpu.dimension_semantics<parallel>], iteration_bounds = array<i64: 1>, scalar_prefetch = 0 : i64, scratch_operands = 0 : i64, tpu.core_type = #tpu.core_type<tc>, window_params = [{transform_indices = @transform_0, window_bounds = array<i64: 8, 512>}, {transform_indices = @transform_1, window_bounds = array<i64: 8, 512>}]} {
    %c0 = arith.constant 0 : index
    %c0_0 = arith.constant 0 : index
    %0 = vector.load %arg1[%c0, %c0_0] : memref<8x512xf32, #tpu.memory_space<vmem>>, vector<8x512xf32>
    %cst = arith.constant 2.000000e+00 : f32
    %1 = vector.broadcast %cst : f32 to vector<8x512xf32>
    %2 = arith.mulf %0, %1 : vector<8x512xf32>
    %c0_1 = arith.constant 0 : index
    %c0_2 = arith.constant 0 : index
    %3 = vector.load %arg2[%c0_1, %c0_2] : memref<8x512xf32, #tpu.memory_space<vmem>>, vector<8x512xf32>
    tpu.vector_store %arg2[%c0_1, %c0_2], %2 {strides = array<i32>} : memref<8x512xf32, #tpu.memory_space<vmem>>, vector<8x512xf32>,
    return
  }
  func.func @transform_0(%arg0: i32) -> (i32, i32) {
    %c0_i32 = arith.constant 0 : i32
    %c0_i32_0 = arith.constant 0 : i32
    return %arg0, %c0_i32 : i32, i32
  }
  func.func @transform_1(%arg0: i32) -> (i32, i32) {
    %c0_i32 = arith.constant 0 : i32
    %c0_i32_0 = arith.constant 0 : i32
    return %arg0, %c0_i32 : i32, i32
  }
}

</mosaic_0001>

<bundles_post_ra>
// kernel: tpu_custom_call.1
= control target key start
LH: loop header
LB: loop body
LE: loop exit
PB: predicated region body
PF: predicated region fallthrough
CT: control target
= control target key end

     0   :  { %6 = vsyncpa [#allocation3], 0  ;;  %s124_s0 = inlined_call_operand.hbm [shape: f32[8,512], index: 0, kind: input, shape index: {}]   ;;  %s125_s1 = inlined_call_operand.hbm [shape: f32[8,512], index: 1, kind: output, shape index: {}]  }
   0x1   :  { %7 = vsyncpa [#allocation4], 0  ;;  %s13_s8 = sshll.u32 %s124_s0, 4  ;;  %s106_s9 = smov [#allocation2]   ;;  %s14_s8 = int_to_ptr.hbm [resolvable:$true] %s13_s8 }
   0x2   :  { %s15_s10 = sshll.u32 %s106_s9, 4  ;;  %s16_s10 = int_to_ptr.vmem [resolvable:$true] %s15_s10 }
   0x3   :  { %18 = dma.hbm_to_vmem [thread:$0]  %s14_s8, 512, %s16_s10, [#allocation3]  }
   0x4   :  { %102 = dma.done.wait [#allocation3], 512  }
   0x5   :  { %103 = vsyncadd [#allocation3], 4294966784  ;;  %v23_v0 = vld [vmem:[#allocation2] sm:$0xff]  ;;  %v24_v1 = vld [vmem:[#allocation2 + $0x8] sm:$0xff]  ;;  %s107_s11 = smov [#allocation5]   ;;  %s42_s0 = sshll.u32 %s125_s1, 4  ;;  %s43_s0 = int_to_ptr.hbm [resolvable:$true] %s42_s0 }
   0x6   :  { %v25_v2 = vld [vmem:[#allocation2 + $0x10] sm:$0xff]  ;;  %v27_v3 = vmul.f32 2.0, %v23_v0  ;;  %v28_v4 = vmul.f32 2.0, %v24_v1  ;;  %v26_v6 = vld [vmem:[#allocation2 + $0x18] sm:$0xff]  ;;  %s40_s12 = sshll.u32 %s107_s11, 4  ;;  %s41_s12 = int_to_ptr.vmem [resolvable:$true] %s40_s12 }
   0x7   :  { %v29_v5 = vmul.f32 2.0, %v25_v2  ;;  %v30_v7 = vmul.f32 2.0, %v26_v6 }
   0x8   :  { %31 = vst [vmem:[#allocation5] sm:$0xff] %v27_v3 }
   0x9   :  { %32 = vst [vmem:[#allocation5 + $0x8] sm:$0xff] %v28_v4 }
   0xa   :  { %33 = vst [vmem:[#allocation5 + $0x10] sm:$0xff] %v29_v5 }
   0xb   :  { %34 = vst [vmem:[#allocation5 + $0x18] sm:$0xff] %v30_v7 }
   0xc   :  { %45 = dma.vmem_to_hbm [thread:$0]  %s41_s12, 512, %s43_s0, [#allocation4]  }
   0xd   :  { %104 = dma.done.wait [#allocation4], 512  }
   0xe   :  { %105 = vsyncadd [#allocation4], 4294966784 }
   0xf   :  { %50 = vsyncpa [#allocation3], 1 }
  0x10   :  { %51 = vsyncpa [#allocation4], 1 }

</bundles_post_ra>
